<compile_context>
chip_gen: v7x
topology: tpu7x:2x2x1
jax: 0.10.0
libtpu: 0.0.40
codegen_flags: <defaults>
</compile_context>

<pallas_src>
import jax
import jax.numpy as jnp
from jax.experimental import pallas as pl
from jax.experimental.pallas import tpu as pltpu

_EPSILON = 1e-9
_LANES = 128
_SUBLANES = 8
_CHUNK_ROWS = 8      # one f32 vreg of rows per fori_loop body instance
_UNROLL = 8


def _cdiv(a, b):
    return -(-a // b)


def _round_up(a, b):
    return _cdiv(a, b) * b


def _hw_config():
    """Best-effort TPU-generation detection; conservative fallback."""
    try:
        kind = jax.devices()[0].device_kind.lower()
    except Exception:  # pragma: no cover - defensive
        kind = ""
    big_vmem_budget = ("v6" in kind) or ("v7" in kind) or ("7x" in kind)
    single_tc = (
        ("v5e" in kind) or ("v5 lite" in kind) or ("v5lite" in kind)
        or ("v6e" in kind) or ("v6 lite" in kind)
    )
    if big_vmem_budget:
        # 8192 rows = 4 MiB per f32 input per buffer; 16 MiB double-buffered.
        return 8192, 48 * 1024 * 1024, single_tc
    # v5e / unknown: 4096 rows = 8 MiB double-buffered, fits default scoped VMEM.
    return 4096, None, single_tc


def _make_kernel(tile_rows, steps, rows_valid, first_masked_tile, any_mask):
    """Build the fused streaming-reduction kernel for a static tiling."""
    n_chunks = tile_rows // _CHUNK_ROWS
    unroll = max(1, min(_UNROLL, n_chunks))

    def kernel(p_ref, t_ref, acc_ref):
        i = pl.program_id(0)   # parallel split axis (megacore on 2-TC parts)
        j = pl.program_id(1)   # sequential reduction axis

        @pl.when(j == 0)
        def _():
            acc_ref[...] = jnp.zeros_like(acc_ref)

        tile_idx = i * steps + j
        zeros = jnp.zeros((_CHUNK_ROWS, _LANES), jnp.float32)

        def accumulate(masked):
            if masked:
                base_row = tile_idx * tile_rows
                rid = jax.lax.broadcasted_iota(
                    jnp.int32, (_CHUNK_ROWS, _LANES), 0)

            def body(c, carry):
                acc_i, acc_s, acc_b = carry
                r0 = pl.multiple_of(c * _CHUNK_ROWS, _CHUNK_ROWS)
                p = p_ref[pl.ds(r0, _CHUNK_ROWS), :].astype(jnp.float32)
                t = t_ref[pl.ds(r0, _CHUNK_ROWS), :].astype(jnp.float32)
                inter = p * t
                spt = p + t
                bce = (t * jnp.log(p + _EPSILON)
                       + (1.0 - t) * jnp.log(1.0 - p + _EPSILON))
                if masked:
                    row = base_row + c * _CHUNK_ROWS + rid
                    valid = row < rows_valid
                    inter = jnp.where(valid, inter, 0.0)
                    spt = jnp.where(valid, spt, 0.0)
                    bce = jnp.where(valid, bce, 0.0)
                return acc_i + inter, acc_s + spt, acc_b + bce

            acc_i, acc_s, acc_b = jax.lax.fori_loop(
                0, n_chunks, body, (zeros, zeros, zeros), unroll=unroll)
            acc_ref[0, 0] += acc_i
            acc_ref[0, 1] += acc_s
            acc_ref[0, 2] += acc_b

        if any_mask:
            # Only tail tiles (partial / overshoot blocks) pay the mask cost.
            @pl.when(tile_idx < first_masked_tile)
            def _():
                accumulate(False)

            @pl.when(tile_idx >= first_masked_tile)
            def _():
                accumulate(True)
        else:
            accumulate(False)

    return kernel


def segmentation_loss(pred_seg, target_seg, bce_weight=0.5):
    """Pallas TPU implementation of Segmentation_Loss.forward (f32 scalar)."""
    assert pred_seg.shape == target_seg.shape
    n = int(pred_seg.size)
    assert n > 0

    max_tile_rows, vmem_limit, single_tc = _hw_config()

    # ravel of a contiguous array + reshape to (rows, 128) is a free bitcast.
    p_flat = jnp.ravel(pred_seg)
    t_flat = jnp.ravel(target_seg)

    n_lane_padded = _round_up(n, _LANES)
    if n_lane_padded != n:
        # Rare lane-ragged case: zero-pad to the next 128 multiple. Zeros
        # contribute exactly 0 to all three partial sums (log(1+1e-9)==0 in
        # f32); the BCE mean divides by the true n, so no in-kernel mask is
        # needed for these padded lanes.
        # TODO(synk): stream the <128-element remainder separately to avoid
        # this full-array copy on lane-ragged inputs.
        pad = n_lane_padded - n
        p_flat = jnp.pad(p_flat, (0, pad))
        t_flat = jnp.pad(t_flat, (0, pad))

    rows = n_lane_padded // _LANES
    p2d = p_flat.reshape(rows, _LANES)
    t2d = t_flat.reshape(rows, _LANES)

    # Megacore split: only on 2-TC parts and only when there is enough work.
    num_splits = 2 if (not single_tc and rows >= 64) else 1
    rows_per_split = _cdiv(rows, num_splits)
    tile_rows = min(max_tile_rows, _round_up(rows_per_split, 32))
    steps = _cdiv(rows_per_split, tile_rows)

    grid_rows = num_splits * steps * tile_rows
    tiles_total = _cdiv(rows, tile_rows)          # valid block count, dim 0
    first_masked_tile = rows // tile_rows         # tiles below this: fully valid
    any_mask = grid_rows > rows

    kernel = _make_kernel(tile_rows, steps, rows, first_masked_tile, any_mask)

    max_block = tiles_total - 1

    def in_index(i, j):
        # Clamp so an overshoot tile (grid > valid blocks) stays in-bounds;
        # its contribution is fully masked to zero in-kernel.
        return (jnp.minimum(i * steps + j, max_block), 0)

    in_spec = pl.BlockSpec((tile_rows, _LANES), in_index)

    read_bytes = n * (pred_seg.dtype.itemsize + target_seg.dtype.itemsize)
    write_bytes = num_splits * 3 * _SUBLANES * _LANES * 4
    cost = pl.CostEstimate(
        flops=12 * n,
        transcendentals=2 * n,
        bytes_accessed=read_bytes + write_bytes,
    )

    partials = pl.pallas_call(
        kernel,
        out_shape=jax.ShapeDtypeStruct(
            (num_splits, 3, _SUBLANES, _LANES), jnp.float32),
        grid_spec=pltpu.PrefetchScalarGridSpec(
            num_scalar_prefetch=0,
            grid=(num_splits, steps),
            in_specs=[in_spec, in_spec],
            out_specs=pl.BlockSpec(
                (1, 3, _SUBLANES, _LANES), lambda i, j: (i, 0, 0, 0)),
        ),
        compiler_params=pltpu.CompilerParams(
            dimension_semantics=("parallel", "arbitrary"),
            vmem_limit_bytes=vmem_limit,
        ),
        cost_estimate=cost,
    )(p2d, t2d)

    # Tiny final combine on (num_splits, 3, 8, 128) partial sums.
    sums = jnp.sum(partials, axis=(0, 2, 3))  # [inter, sum(p)+sum(t), bce_sum]
    inter, spt, bce_sum = sums[0], sums[1], sums[2]
    dice = 1.0 - (2.0 * inter + _EPSILON) / (spt + _EPSILON)
    bce = -(bce_sum / n)
    return (1.0 - bce_weight) * dice + bce_weight * bce


def _reference(pred_seg, target_seg, bce_weight=0.5):
    p = pred_seg.astype(jnp.float32)
    t = target_seg.astype(jnp.float32)
    bce = -jnp.mean(
        t * jnp.log(p + _EPSILON) + (1.0 - t) * jnp.log(1.0 - p + _EPSILON)
    )
    dice = 1.0 - (jnp.sum(2.0 * p * t) + _EPSILON) / (
        jnp.sum(p) + jnp.sum(t) + _EPSILON
    )
    return (1.0 - bce_weight) * dice + bce_weight * bce


if __name__ == "__main__":
    key = jax.random.PRNGKey(0)
    k1, k2 = jax.random.split(key)

    # Primary small NCHW test (128-aligned -> zero-copy, single masked tile).
    shape = (2, 4, 16, 16)
    pred_seg = jax.nn.sigmoid(jax.random.normal(k1, shape, dtype=jnp.float32))
    target_seg = (
        jax.random.uniform(k2, shape, dtype=jnp.float32) > 0.5
    ).astype(jnp.float32)

    loss = jax.block_until_ready(segmentation_loss(pred_seg, target_seg))
    ref = jax.block_until_ready(_reference(pred_seg, target_seg))
    assert jnp.allclose(loss, ref, rtol=1e-4, atol=1e-6), (loss, ref)

    # Ragged shape: exercises the lane-padding + masked-tail path.
    k3, k4 = jax.random.split(k2)
    shape2 = (2, 3, 15, 17)
    pred2 = jax.nn.sigmoid(jax.random.normal(k3, shape2, dtype=jnp.float32))
    targ2 = (jax.random.uniform(k4, shape2, dtype=jnp.float32) > 0.5).astype(
        jnp.float32
    )
    loss2 = jax.block_until_ready(segmentation_loss(pred2, targ2))
    ref2 = jax.block_until_ready(_reference(pred2, targ2))
    assert jnp.allclose(loss2, ref2, rtol=1e-4, atol=1e-6), (loss2, ref2)

    # Larger shape: exercises multi-tile streaming (and the 2-way split on
    # 2-TensorCore parts).
    k5, k6 = jax.random.split(k4)
    shape3 = (2, 4, 192, 192)
    pred3 = jax.nn.sigmoid(jax.random.normal(k5, shape3, dtype=jnp.float32))
    targ3 = (jax.random.uniform(k6, shape3, dtype=jnp.float32) > 0.5).astype(
        jnp.float32
    )
    loss3 = jax.block_until_ready(segmentation_loss(pred3, targ3))
    ref3 = jax.block_until_ready(_reference(pred3, targ3))
    assert jnp.allclose(loss3, ref3, rtol=1e-4, atol=1e-6), (loss3, ref3)

    print("KERNEL_OK")
</pallas_src>

<mosaic_0001>
module attributes {stable_mosaic.version = 11 : i64} {
  func.func @kernel(%arg0: i32, %arg1: i32, %arg2: memref<32x128xf32, #tpu.memory_space<vmem>>, %arg3: memref<32x128xf32, #tpu.memory_space<vmem>>, %arg4: memref<1x3x8x128xf32, #tpu.memory_space<vmem>>) attributes {dimension_semantics = [#tpu.dimension_semantics<parallel>, #tpu.dimension_semantics<arbitrary>], iteration_bounds = array<i64: 1, 1>, scalar_prefetch = 0 : i64, scratch_operands = 0 : i64, tpu.core_type = #tpu.core_type<tc>, window_params = [{transform_indices = @transform_0, window_bounds = array<i64: 32, 128>}, {transform_indices = @transform_1, window_bounds = array<i64: 32, 128>}, {transform_indices = @transform_2, window_bounds = array<i64: 1, 3, 8, 128>}]} {
    %c0_i32 = arith.constant 0 : i32
    %0 = arith.cmpi eq, %arg1, %c0_i32 : i32
    %1 = arith.extui %0 : i1 to i32
    %c0_i32_0 = arith.constant 0 : i32
    %2 = arith.cmpi ne, %1, %c0_i32_0 : i32
    scf.if %2 {
      %cst_5 = arith.constant 0.000000e+00 : f32
      %12 = vector.broadcast %cst_5 : f32 to vector<1x3x8x128xf32>
      %c0 = arith.constant 0 : index
      %c0_6 = arith.constant 0 : index
      %c0_7 = arith.constant 0 : index
      %c0_8 = arith.constant 0 : index
      %13 = vector.load %arg4[%c0, %c0_6, %c0_7, %c0_8] : memref<1x3x8x128xf32, #tpu.memory_space<vmem>>, vector<1x3x8x128xf32>
      tpu.vector_store %arg4[%c0, %c0_6, %c0_7, %c0_8], %12 {strides = array<i32>} : memref<1x3x8x128xf32, #tpu.memory_space<vmem>>, vector<1x3x8x128xf32>,
    } else {
    }
    %c1_i32 = arith.constant 1 : i32
    %3 = arith.muli %arg0, %c1_i32 : i32
    %4 = arith.addi %3, %arg1 : i32
    %cst = arith.constant 0.000000e+00 : f32
    %5 = vector.broadcast %cst : f32 to vector<8x128xf32>
    %c0_i32_1 = arith.constant 0 : i32
    %6 = arith.cmpi slt, %4, %c0_i32_1 : i32
    %7 = arith.extui %6 : i1 to i32
    %c0_i32_2 = arith.constant 0 : i32
    %8 = arith.cmpi ne, %7, %c0_i32_2 : i32
    scf.if %8 {
      %c0_i32_5 = arith.constant 0 : i32
      %c8_i32 = arith.constant 8 : i32
      %12 = arith.muli %c0_i32_5, %c8_i32 : i32
      %13 = tpu.assume_multiple %12, 8 : i32
      %14 = arith.index_cast %13 : i32 to index
      %c0 = arith.constant 0 : index
      %15 = vector.load %arg2[%14, %c0] : memref<32x128xf32, #tpu.memory_space<vmem>>, vector<8x128xf32>
      %16 = arith.index_cast %13 : i32 to index
      %c0_6 = arith.constant 0 : index
      %17 = vector.load %arg3[%16, %c0_6] : memref<32x128xf32, #tpu.memory_space<vmem>>, vector<8x128xf32>
      %18 = arith.mulf %15, %17 : vector<8x128xf32>
      %19 = arith.addf %15, %17 : vector<8x128xf32>
      %cst_7 = arith.constant 9.99999971E-10 : f32
      %20 = vector.broadcast %cst_7 : f32 to vector<8x128xf32>
      %21 = arith.addf %15, %20 : vector<8x128xf32>
      %22 = math.log %21 : vector<8x128xf32>
      %23 = arith.mulf %17, %22 : vector<8x128xf32>
      %cst_8 = arith.constant 1.000000e+00 : f32
      %24 = vector.broadcast %cst_8 : f32 to vector<8x128xf32>
      %25 = arith.subf %24, %17 : vector<8x128xf32>
      %cst_9 = arith.constant 1.000000e+00 : f32
      %26 = vector.broadcast %cst_9 : f32 to vector<8x128xf32>
      %27 = arith.subf %26, %15 : vector<8x128xf32>
      %cst_10 = arith.constant 9.99999971E-10 : f32
      %28 = vector.broadcast %cst_10 : f32 to vector<8x128xf32>
      %29 = arith.addf %27, %28 : vector<8x128xf32>
      %30 = math.log %29 : vector<8x128xf32>
      %31 = arith.mulf %25, %30 : vector<8x128xf32>
      %32 = arith.addf %23, %31 : vector<8x128xf32>
      %33 = arith.addf %5, %18 : vector<8x128xf32>
      %34 = arith.addf %5, %19 : vector<8x128xf32>
      %35 = arith.addf %5, %32 : vector<8x128xf32>
      %c1_i32_11 = arith.constant 1 : i32
      %c8_i32_12 = arith.constant 8 : i32
      %36 = arith.muli %c1_i32_11, %c8_i32_12 : i32
      %37 = tpu.assume_multiple %36, 8 : i32
      %38 = arith.index_cast %37 : i32 to index
      %c0_13 = arith.constant 0 : index
      %39 = vector.load %arg2[%38, %c0_13] : memref<32x128xf32, #tpu.memory_space<vmem>>, vector<8x128xf32>
      %40 = arith.index_cast %37 : i32 to index
      %c0_14 = arith.constant 0 : index
      %41 = vector.load %arg3[%40, %c0_14] : memref<32x128xf32, #tpu.memory_space<vmem>>, vector<8x128xf32>
      %42 = arith.mulf %39, %41 : vector<8x128xf32>
      %43 = arith.addf %39, %41 : vector<8x128xf32>
      %cst_15 = arith.constant 9.99999971E-10 : f32
      %44 = vector.broadcast %cst_15 : f32 to vector<8x128xf32>
      %45 = arith.addf %39, %44 : vector<8x128xf32>
      %46 = math.log %45 : vector<8x128xf32>
      %47 = arith.mulf %41, %46 : vector<8x128xf32>
      %cst_16 = arith.constant 1.000000e+00 : f32
      %48 = vector.broadcast %cst_16 : f32 to vector<8x128xf32>
      %49 = arith.subf %48, %41 : vector<8x128xf32>
      %cst_17 = arith.constant 1.000000e+00 : f32
      %50 = vector.broadcast %cst_17 : f32 to vector<8x128xf32>
      %51 = arith.subf %50, %39 : vector<8x128xf32>
      %cst_18 = arith.constant 9.99999971E-10 : f32
      %52 = vector.broadcast %cst_18 : f32 to vector<8x128xf32>
      %53 = arith.addf %51, %52 : vector<8x128xf32>
      %54 = math.log %53 : vector<8x128xf32>
      %55 = arith.mulf %49, %54 : vector<8x128xf32>
      %56 = arith.addf %47, %55 : vector<8x128xf32>
      %57 = arith.addf %33, %42 : vector<8x128xf32>
      %58 = arith.addf %34, %43 : vector<8x128xf32>
      %59 = arith.addf %35, %56 : vector<8x128xf32>
      %c2_i32 = arith.constant 2 : i32
      %c8_i32_19 = arith.constant 8 : i32
      %60 = arith.muli %c2_i32, %c8_i32_19 : i32
      %61 = tpu.assume_multiple %60, 8 : i32
      %62 = arith.index_cast %61 : i32 to index
      %c0_20 = arith.constant 0 : index
      %63 = vector.load %arg2[%62, %c0_20] : memref<32x128xf32, #tpu.memory_space<vmem>>, vector<8x128xf32>
      %64 = arith.index_cast %61 : i32 to index
      %c0_21 = arith.constant 0 : index
      %65 = vector.load %arg3[%64, %c0_21] : memref<32x128xf32, #tpu.memory_space<vmem>>, vector<8x128xf32>
      %66 = arith.mulf %63, %65 : vector<8x128xf32>
      %67 = arith.addf %63, %65 : vector<8x128xf32>
      %cst_22 = arith.constant 9.99999971E-10 : f32
      %68 = vector.broadcast %cst_22 : f32 to vector<8x128xf32>
      %69 = arith.addf %63, %68 : vector<8x128xf32>
      %70 = math.log %69 : vector<8x128xf32>
      %71 = arith.mulf %65, %70 : vector<8x128xf32>
      %cst_23 = arith.constant 1.000000e+00 : f32
      %72 = vector.broadcast %cst_23 : f32 to vector<8x128xf32>
      %73 = arith.subf %72, %65 : vector<8x128xf32>
      %cst_24 = arith.constant 1.000000e+00 : f32
      %74 = vector.broadcast %cst_24 : f32 to vector<8x128xf32>
      %75 = arith.subf %74, %63 : vector<8x128xf32>
      %cst_25 = arith.constant 9.99999971E-10 : f32
      %76 = vector.broadcast %cst_25 : f32 to vector<8x128xf32>
      %77 = arith.addf %75, %76 : vector<8x128xf32>
      %78 = math.log %77 : vector<8x128xf32>
      %79 = arith.mulf %73, %78 : vector<8x128xf32>
      %80 = arith.addf %71, %79 : vector<8x128xf32>
      %81 = arith.addf %57, %66 : vector<8x128xf32>
      %82 = arith.addf %58, %67 : vector<8x128xf32>
      %83 = arith.addf %59, %80 : vector<8x128xf32>
      %c3_i32 = arith.constant 3 : i32
      %c8_i32_26 = arith.constant 8 : i32
      %84 = arith.muli %c3_i32, %c8_i32_26 : i32
      %85 = tpu.assume_multiple %84, 8 : i32
      %86 = arith.index_cast %85 : i32 to index
      %c0_27 = arith.constant 0 : index
      %87 = vector.load %arg2[%86, %c0_27] : memref<32x128xf32, #tpu.memory_space<vmem>>, vector<8x128xf32>
      %88 = arith.index_cast %85 : i32 to index
      %c0_28 = arith.constant 0 : index
      %89 = vector.load %arg3[%88, %c0_28] : memref<32x128xf32, #tpu.memory_space<vmem>>, vector<8x128xf32>
      %90 = arith.mulf %87, %89 : vector<8x128xf32>
      %91 = arith.addf %87, %89 : vector<8x128xf32>
      %cst_29 = arith.constant 9.99999971E-10 : f32
      %92 = vector.broadcast %cst_29 : f32 to vector<8x128xf32>
      %93 = arith.addf %87, %92 : vector<8x128xf32>
      %94 = math.log %93 : vector<8x128xf32>
      %95 = arith.mulf %89, %94 : vector<8x128xf32>
      %cst_30 = arith.constant 1.000000e+00 : f32
      %96 = vector.broadcast %cst_30 : f32 to vector<8x128xf32>
      %97 = arith.subf %96, %89 : vector<8x128xf32>
      %cst_31 = arith.constant 1.000000e+00 : f32
      %98 = vector.broadcast %cst_31 : f32 to vector<8x128xf32>
      %99 = arith.subf %98, %87 : vector<8x128xf32>
      %cst_32 = arith.constant 9.99999971E-10 : f32
      %100 = vector.broadcast %cst_32 : f32 to vector<8x128xf32>
      %101 = arith.addf %99, %100 : vector<8x128xf32>
      %102 = math.log %101 : vector<8x128xf32>
      %103 = arith.mulf %97, %102 : vector<8x128xf32>
      %104 = arith.addf %95, %103 : vector<8x128xf32>
      %105 = arith.addf %81, %90 : vector<8x128xf32>
      %106 = arith.addf %82, %91 : vector<8x128xf32>
      %107 = arith.addf %83, %104 : vector<8x128xf32>
      %c4_i32 = arith.constant 4 : i32
      %c0_33 = arith.constant 0 : index
      %c0_34 = arith.constant 0 : index
      %c0_35 = arith.constant 0 : index
      %c0_36 = arith.constant 0 : index
      %108 = vector.load %arg4[%c0_33, %c0_34, %c0_35, %c0_36] : memref<1x3x8x128xf32, #tpu.memory_space<vmem>>, vector<1x1x8x128xf32>
      %109 = vector.shape_cast %108 : vector<1x1x8x128xf32> to vector<8x128xf32>
      %110 = arith.addf %109, %105 : vector<8x128xf32>
      %c0_37 = arith.constant 0 : index
      %c0_38 = arith.constant 0 : index
      %c0_39 = arith.constant 0 : index
      %c0_40 = arith.constant 0 : index
      %111 = vector.load %arg4[%c0_37, %c0_38, %c0_39, %c0_40] : memref<1x3x8x128xf32, #tpu.memory_space<vmem>>, vector<1x1x8x128xf32>
      %112 = vector.shape_cast %111 : vector<1x1x8x128xf32> to vector<8x128xf32>
      %113 = vector.shape_cast %110 : vector<8x128xf32> to vector<1x1x8x128xf32>
      tpu.vector_store %arg4[%c0_37, %c0_38, %c0_39, %c0_40], %113 {strides = array<i32>} : memref<1x3x8x128xf32, #tpu.memory_space<vmem>>, vector<1x1x8x128xf32>,
      %c0_41 = arith.constant 0 : index
      %c1 = arith.constant 1 : index
      %c0_42 = arith.constant 0 : index
      %c0_43 = arith.constant 0 : index
      %114 = vector.load %arg4[%c0_41, %c1, %c0_42, %c0_43] : memref<1x3x8x128xf32, #tpu.memory_space<vmem>>, vector<1x1x8x128xf32>
      %115 = vector.shape_cast %114 : vector<1x1x8x128xf32> to vector<8x128xf32>
      %116 = arith.addf %115, %106 : vector<8x128xf32>
      %c0_44 = arith.constant 0 : index
      %c1_45 = arith.constant 1 : index
      %c0_46 = arith.constant 0 : index
      %c0_47 = arith.constant 0 : index
      %117 = vector.load %arg4[%c0_44, %c1_45, %c0_46, %c0_47] : memref<1x3x8x128xf32, #tpu.memory_space<vmem>>, vector<1x1x8x128xf32>
      %118 = vector.shape_cast %117 : vector<1x1x8x128xf32> to vector<8x128xf32>
      %119 = vector.shape_cast %116 : vector<8x128xf32> to vector<1x1x8x128xf32>
      tpu.vector_store %arg4[%c0_44, %c1_45, %c0_46, %c0_47], %119 {strides = array<i32>} : memref<1x3x8x128xf32, #tpu.memory_space<vmem>>, vector<1x1x8x128xf32>,
      %c0_48 = arith.constant 0 : index
      %c2 = arith.constant 2 : index
      %c0_49 = arith.constant 0 : index
      %c0_50 = arith.constant 0 : index
      %120 = vector.load %arg4[%c0_48, %c2, %c0_49, %c0_50] : memref<1x3x8x128xf32, #tpu.memory_space<vmem>>, vector<1x1x8x128xf32>
      %121 = vector.shape_cast %120 : vector<1x1x8x128xf32> to vector<8x128xf32>
      %122 = arith.addf %121, %107 : vector<8x128xf32>
      %c0_51 = arith.constant 0 : index
      %c2_52 = arith.constant 2 : index
      %c0_53 = arith.constant 0 : index
      %c0_54 = arith.constant 0 : index
      %123 = vector.load %arg4[%c0_51, %c2_52, %c0_53, %c0_54] : memref<1x3x8x128xf32, #tpu.memory_space<vmem>>, vector<1x1x8x128xf32>
      %124 = vector.shape_cast %123 : vector<1x1x8x128xf32> to vector<8x128xf32>
      %125 = vector.shape_cast %122 : vector<8x128xf32> to vector<1x1x8x128xf32>
      tpu.vector_store %arg4[%c0_51, %c2_52, %c0_53, %c0_54], %125 {strides = array<i32>} : memref<1x3x8x128xf32, #tpu.memory_space<vmem>>, vector<1x1x8x128xf32>,
    } else {
    }
    %c0_i32_3 = arith.constant 0 : i32
    %9 = arith.cmpi sge, %4, %c0_i32_3 : i32
    %10 = arith.extui %9 : i1 to i32
    %c0_i32_4 = arith.constant 0 : i32
    %11 = arith.cmpi ne, %10, %c0_i32_4 : i32
    scf.if %11 {
      %c32_i32 = arith.constant 32 : i32
      %12 = arith.muli %4, %c32_i32 : i32
      %13 = tpu.iota {dimensions = array<i32: 0>} : vector<8x128xi32>
      %c0_i32_5 = arith.constant 0 : i32
      %c8_i32 = arith.constant 8 : i32
      %14 = arith.muli %c0_i32_5, %c8_i32 : i32
      %15 = tpu.assume_multiple %14, 8 : i32
      %16 = arith.index_cast %15 : i32 to index
      %c0 = arith.constant 0 : index
      %17 = vector.load %arg2[%16, %c0] : memref<32x128xf32, #tpu.memory_space<vmem>>, vector<8x128xf32>
      %18 = arith.index_cast %15 : i32 to index
      %c0_6 = arith.constant 0 : index
      %19 = vector.load %arg3[%18, %c0_6] : memref<32x128xf32, #tpu.memory_space<vmem>>, vector<8x128xf32>
      %20 = arith.mulf %17, %19 : vector<8x128xf32>
      %21 = arith.addf %17, %19 : vector<8x128xf32>
      %cst_7 = arith.constant 9.99999971E-10 : f32
      %22 = vector.broadcast %cst_7 : f32 to vector<8x128xf32>
      %23 = arith.addf %17, %22 : vector<8x128xf32>
      %24 = math.log %23 : vector<8x128xf32>
      %25 = arith.mulf %19, %24 : vector<8x128xf32>
      %cst_8 = arith.constant 1.000000e+00 : f32
      %26 = vector.broadcast %cst_8 : f32 to vector<8x128xf32>
      %27 = arith.subf %26, %19 : vector<8x128xf32>
      %cst_9 = arith.constant 1.000000e+00 : f32
      %28 = vector.broadcast %cst_9 : f32 to vector<8x128xf32>
      %29 = arith.subf %28, %17 : vector<8x128xf32>
      %cst_10 = arith.constant 9.99999971E-10 : f32
      %30 = vector.broadcast %cst_10 : f32 to vector<8x128xf32>
      %31 = arith.addf %29, %30 : vector<8x128xf32>
      %32 = math.log %31 : vector<8x128xf32>
      %33 = arith.mulf %27, %32 : vector<8x128xf32>
      %34 = arith.addf %25, %33 : vector<8x128xf32>
      %c8_i32_11 = arith.constant 8 : i32
      %35 = arith.muli %c0_i32_5, %c8_i32_11 : i32
      %36 = arith.addi %12, %35 : i32
      %37 = vector.broadcast %36 : i32 to vector<8x128xi32>
      %38 = arith.addi %37, %13 : vector<8x128xi32>
      %c16_i32 = arith.constant 16 : i32
      %39 = vector.broadcast %c16_i32 : i32 to vector<8x128xi32>
      %40 = arith.cmpi slt, %38, %39 : vector<8x128xi32>
      %cst_12 = arith.constant 0.000000e+00 : f32
      %41 = vector.broadcast %cst_12 : f32 to vector<8x128xf32>
      %42 = arith.select %40, %20, %41 : vector<8x128xi1>, vector<8x128xf32>
      %cst_13 = arith.constant 0.000000e+00 : f32
      %43 = vector.broadcast %cst_13 : f32 to vector<8x128xf32>
      %44 = arith.select %40, %21, %43 : vector<8x128xi1>, vector<8x128xf32>
      %cst_14 = arith.constant 0.000000e+00 : f32
      %45 = vector.broadcast %cst_14 : f32 to vector<8x128xf32>
      %46 = arith.select %40, %34, %45 : vector<8x128xi1>, vector<8x128xf32>
      %47 = arith.addf %5, %42 : vector<8x128xf32>
      %48 = arith.addf %5, %44 : vector<8x128xf32>
      %49 = arith.addf %5, %46 : vector<8x128xf32>
      %c1_i32_15 = arith.constant 1 : i32
      %c8_i32_16 = arith.constant 8 : i32
      %50 = arith.muli %c1_i32_15, %c8_i32_16 : i32
      %51 = tpu.assume_multiple %50, 8 : i32
      %52 = arith.index_cast %51 : i32 to index
      %c0_17 = arith.constant 0 : index
      %53 = vector.load %arg2[%52, %c0_17] : memref<32x128xf32, #tpu.memory_space<vmem>>, vector<8x128xf32>
      %54 = arith.index_cast %51 : i32 to index
      %c0_18 = arith.constant 0 : index
      %55 = vector.load %arg3[%54, %c0_18] : memref<32x128xf32, #tpu.memory_space<vmem>>, vector<8x128xf32>
      %56 = arith.mulf %53, %55 : vector<8x128xf32>
      %57 = arith.addf %53, %55 : vector<8x128xf32>
      %cst_19 = arith.constant 9.99999971E-10 : f32
      %58 = vector.broadcast %cst_19 : f32 to vector<8x128xf32>
      %59 = arith.addf %53, %58 : vector<8x128xf32>
      %60 = math.log %59 : vector<8x128xf32>
      %61 = arith.mulf %55, %60 : vector<8x128xf32>
      %cst_20 = arith.constant 1.000000e+00 : f32
      %62 = vector.broadcast %cst_20 : f32 to vector<8x128xf32>
      %63 = arith.subf %62, %55 : vector<8x128xf32>
      %cst_21 = arith.constant 1.000000e+00 : f32
      %64 = vector.broadcast %cst_21 : f32 to vector<8x128xf32>
      %65 = arith.subf %64, %53 : vector<8x128xf32>
      %cst_22 = arith.constant 9.99999971E-10 : f32
      %66 = vector.broadcast %cst_22 : f32 to vector<8x128xf32>
      %67 = arith.addf %65, %66 : vector<8x128xf32>
      %68 = math.log %67 : vector<8x128xf32>
      %69 = arith.mulf %63, %68 : vector<8x128xf32>
      %70 = arith.addf %61, %69 : vector<8x128xf32>
      %c8_i32_23 = arith.constant 8 : i32
      %71 = arith.muli %c1_i32_15, %c8_i32_23 : i32
      %72 = arith.addi %12, %71 : i32
      %73 = vector.broadcast %72 : i32 to vector<8x128xi32>
      %74 = arith.addi %73, %13 : vector<8x128xi32>
      %c16_i32_24 = arith.constant 16 : i32
      %75 = vector.broadcast %c16_i32_24 : i32 to vector<8x128xi32>
      %76 = arith.cmpi slt, %74, %75 : vector<8x128xi32>
      %cst_25 = arith.constant 0.000000e+00 : f32
      %77 = vector.broadcast %cst_25 : f32 to vector<8x128xf32>
      %78 = arith.select %76, %56, %77 : vector<8x128xi1>, vector<8x128xf32>
      %cst_26 = arith.constant 0.000000e+00 : f32
      %79 = vector.broadcast %cst_26 : f32 to vector<8x128xf32>
      %80 = arith.select %76, %57, %79 : vector<8x128xi1>, vector<8x128xf32>
      %cst_27 = arith.constant 0.000000e+00 : f32
      %81 = vector.broadcast %cst_27 : f32 to vector<8x128xf32>
      %82 = arith.select %76, %70, %81 : vector<8x128xi1>, vector<8x128xf32>
      %83 = arith.addf %47, %78 : vector<8x128xf32>
      %84 = arith.addf %48, %80 : vector<8x128xf32>
      %85 = arith.addf %49, %82 : vector<8x128xf32>
      %c2_i32 = arith.constant 2 : i32
      %c8_i32_28 = arith.constant 8 : i32
      %86 = arith.muli %c2_i32, %c8_i32_28 : i32
      %87 = tpu.assume_multiple %86, 8 : i32
      %88 = arith.index_cast %87 : i32 to index
      %c0_29 = arith.constant 0 : index
      %89 = vector.load %arg2[%88, %c0_29] : memref<32x128xf32, #tpu.memory_space<vmem>>, vector<8x128xf32>
      %90 = arith.index_cast %87 : i32 to index
      %c0_30 = arith.constant 0 : index
      %91 = vector.load %arg3[%90, %c0_30] : memref<32x128xf32, #tpu.memory_space<vmem>>, vector<8x128xf32>
      %92 = arith.mulf %89, %91 : vector<8x128xf32>
      %93 = arith.addf %89, %91 : vector<8x128xf32>
      %cst_31 = arith.constant 9.99999971E-10 : f32
      %94 = vector.broadcast %cst_31 : f32 to vector<8x128xf32>
      %95 = arith.addf %89, %94 : vector<8x128xf32>
      %96 = math.log %95 : vector<8x128xf32>
      %97 = arith.mulf %91, %96 : vector<8x128xf32>
      %cst_32 = arith.constant 1.000000e+00 : f32
      %98 = vector.broadcast %cst_32 : f32 to vector<8x128xf32>
      %99 = arith.subf %98, %91 : vector<8x128xf32>
      %cst_33 = arith.constant 1.000000e+00 : f32
      %100 = vector.broadcast %cst_33 : f32 to vector<8x128xf32>
      %101 = arith.subf %100, %89 : vector<8x128xf32>
      %cst_34 = arith.constant 9.99999971E-10 : f32
      %102 = vector.broadcast %cst_34 : f32 to vector<8x128xf32>
      %103 = arith.addf %101, %102 : vector<8x128xf32>
      %104 = math.log %103 : vector<8x128xf32>
      %105 = arith.mulf %99, %104 : vector<8x128xf32>
      %106 = arith.addf %97, %105 : vector<8x128xf32>
      %c8_i32_35 = arith.constant 8 : i32
      %107 = arith.muli %c2_i32, %c8_i32_35 : i32
      %108 = arith.addi %12, %107 : i32
      %109 = vector.broadcast %108 : i32 to vector<8x128xi32>
      %110 = arith.addi %109, %13 : vector<8x128xi32>
      %c16_i32_36 = arith.constant 16 : i32
      %111 = vector.broadcast %c16_i32_36 : i32 to vector<8x128xi32>
      %112 = arith.cmpi slt, %110, %111 : vector<8x128xi32>
      %cst_37 = arith.constant 0.000000e+00 : f32
      %113 = vector.broadcast %cst_37 : f32 to vector<8x128xf32>
      %114 = arith.select %112, %92, %113 : vector<8x128xi1>, vector<8x128xf32>
      %cst_38 = arith.constant 0.000000e+00 : f32
      %115 = vector.broadcast %cst_38 : f32 to vector<8x128xf32>
      %116 = arith.select %112, %93, %115 : vector<8x128xi1>, vector<8x128xf32>
      %cst_39 = arith.constant 0.000000e+00 : f32
      %117 = vector.broadcast %cst_39 : f32 to vector<8x128xf32>
      %118 = arith.select %112, %106, %117 : vector<8x128xi1>, vector<8x128xf32>
      %119 = arith.addf %83, %114 : vector<8x128xf32>
      %120 = arith.addf %84, %116 : vector<8x128xf32>
      %121 = arith.addf %85, %118 : vector<8x128xf32>
      %c3_i32 = arith.constant 3 : i32
      %c8_i32_40 = arith.constant 8 : i32
      %122 = arith.muli %c3_i32, %c8_i32_40 : i32
      %123 = tpu.assume_multiple %122, 8 : i32
      %124 = arith.index_cast %123 : i32 to index
      %c0_41 = arith.constant 0 : index
      %125 = vector.load %arg2[%124, %c0_41] : memref<32x128xf32, #tpu.memory_space<vmem>>, vector<8x128xf32>
      %126 = arith.index_cast %123 : i32 to index
      %c0_42 = arith.constant 0 : index
      %127 = vector.load %arg3[%126, %c0_42] : memref<32x128xf32, #tpu.memory_space<vmem>>, vector<8x128xf32>
      %128 = arith.mulf %125, %127 : vector<8x128xf32>
      %129 = arith.addf %125, %127 : vector<8x128xf32>
      %cst_43 = arith.constant 9.99999971E-10 : f32
      %130 = vector.broadcast %cst_43 : f32 to vector<8x128xf32>
      %131 = arith.addf %125, %130 : vector<8x128xf32>
      %132 = math.log %131 : vector<8x128xf32>
      %133 = arith.mulf %127, %132 : vector<8x128xf32>
      %cst_44 = arith.constant 1.000000e+00 : f32
      %134 = vector.broadcast %cst_44 : f32 to vector<8x128xf32>
      %135 = arith.subf %134, %127 : vector<8x128xf32>
      %cst_45 = arith.constant 1.000000e+00 : f32
      %136 = vector.broadcast %cst_45 : f32 to vector<8x128xf32>
      %137 = arith.subf %136, %125 : vector<8x128xf32>
      %cst_46 = arith.constant 9.99999971E-10 : f32
      %138 = vector.broadcast %cst_46 : f32 to vector<8x128xf32>
      %139 = arith.addf %137, %138 : vector<8x128xf32>
      %140 = math.log %139 : vector<8x128xf32>
      %141 = arith.mulf %135, %140 : vector<8x128xf32>
      %142 = arith.addf %133, %141 : vector<8x128xf32>
      %c8_i32_47 = arith.constant 8 : i32
      %143 = arith.muli %c3_i32, %c8_i32_47 : i32
      %144 = arith.addi %12, %143 : i32
      %145 = vector.broadcast %144 : i32 to vector<8x128xi32>
      %146 = arith.addi %145, %13 : vector<8x128xi32>
      %c16_i32_48 = arith.constant 16 : i32
      %147 = vector.broadcast %c16_i32_48 : i32 to vector<8x128xi32>
      %148 = arith.cmpi slt, %146, %147 : vector<8x128xi32>
      %cst_49 = arith.constant 0.000000e+00 : f32
      %149 = vector.broadcast %cst_49 : f32 to vector<8x128xf32>
      %150 = arith.select %148, %128, %149 : vector<8x128xi1>, vector<8x128xf32>
      %cst_50 = arith.constant 0.000000e+00 : f32
      %151 = vector.broadcast %cst_50 : f32 to vector<8x128xf32>
      %152 = arith.select %148, %129, %151 : vector<8x128xi1>, vector<8x128xf32>
      %cst_51 = arith.constant 0.000000e+00 : f32
      %153 = vector.broadcast %cst_51 : f32 to vector<8x128xf32>
      %154 = arith.select %148, %142, %153 : vector<8x128xi1>, vector<8x128xf32>
      %155 = arith.addf %119, %150 : vector<8x128xf32>
      %156 = arith.addf %120, %152 : vector<8x128xf32>
      %157 = arith.addf %121, %154 : vector<8x128xf32>
      %c4_i32 = arith.constant 4 : i32
      %c0_52 = arith.constant 0 : index
      %c0_53 = arith.constant 0 : index
      %c0_54 = arith.constant 0 : index
      %c0_55 = arith.constant 0 : index
      %158 = vector.load %arg4[%c0_52, %c0_53, %c0_54, %c0_55] : memref<1x3x8x128xf32, #tpu.memory_space<vmem>>, vector<1x1x8x128xf32>
      %159 = vector.shape_cast %158 : vector<1x1x8x128xf32> to vector<8x128xf32>
      %160 = arith.addf %159, %155 : vector<8x128xf32>
      %c0_56 = arith.constant 0 : index
      %c0_57 = arith.constant 0 : index
      %c0_58 = arith.constant 0 : index
      %c0_59 = arith.constant 0 : index
      %161 = vector.load %arg4[%c0_56, %c0_57, %c0_58, %c0_59] : memref<1x3x8x128xf32, #tpu.memory_space<vmem>>, vector<1x1x8x128xf32>
      %162 = vector.shape_cast %161 : vector<1x1x8x128xf32> to vector<8x128xf32>
      %163 = vector.shape_cast %160 : vector<8x128xf32> to vector<1x1x8x128xf32>
      tpu.vector_store %arg4[%c0_56, %c0_57, %c0_58, %c0_59], %163 {strides = array<i32>} : memref<1x3x8x128xf32, #tpu.memory_space<vmem>>, vector<1x1x8x128xf32>,
      %c0_60 = arith.constant 0 : index
      %c1 = arith.constant 1 : index
      %c0_61 = arith.constant 0 : index
      %c0_62 = arith.constant 0 : index
      %164 = vector.load %arg4[%c0_60, %c1, %c0_61, %c0_62] : memref<1x3x8x128xf32, #tpu.memory_space<vmem>>, vector<1x1x8x128xf32>
      %165 = vector.shape_cast %164 : vector<1x1x8x128xf32> to vector<8x128xf32>
      %166 = arith.addf %165, %156 : vector<8x128xf32>
      %c0_63 = arith.constant 0 : index
      %c1_64 = arith.constant 1 : index
      %c0_65 = arith.constant 0 : index
      %c0_66 = arith.constant 0 : index
      %167 = vector.load %arg4[%c0_63, %c1_64, %c0_65, %c0_66] : memref<1x3x8x128xf32, #tpu.memory_space<vmem>>, vector<1x1x8x128xf32>
      %168 = vector.shape_cast %167 : vector<1x1x8x128xf32> to vector<8x128xf32>
      %169 = vector.shape_cast %166 : vector<8x128xf32> to vector<1x1x8x128xf32>
      tpu.vector_store %arg4[%c0_63, %c1_64, %c0_65, %c0_66], %169 {strides = array<i32>} : memref<1x3x8x128xf32, #tpu.memory_space<vmem>>, vector<1x1x8x128xf32>,
      %c0_67 = arith.constant 0 : index
      %c2 = arith.constant 2 : index
      %c0_68 = arith.constant 0 : index
      %c0_69 = arith.constant 0 : index
      %170 = vector.load %arg4[%c0_67, %c2, %c0_68, %c0_69] : memref<1x3x8x128xf32, #tpu.memory_space<vmem>>, vector<1x1x8x128xf32>
      %171 = vector.shape_cast %170 : vector<1x1x8x128xf32> to vector<8x128xf32>
      %172 = arith.addf %171, %157 : vector<8x128xf32>
      %c0_70 = arith.constant 0 : index
      %c2_71 = arith.constant 2 : index
      %c0_72 = arith.constant 0 : index
      %c0_73 = arith.constant 0 : index
      %173 = vector.load %arg4[%c0_70, %c2_71, %c0_72, %c0_73] : memref<1x3x8x128xf32, #tpu.memory_space<vmem>>, vector<1x1x8x128xf32>
      %174 = vector.shape_cast %173 : vector<1x1x8x128xf32> to vector<8x128xf32>
      %175 = vector.shape_cast %172 : vector<8x128xf32> to vector<1x1x8x128xf32>
      tpu.vector_store %arg4[%c0_70, %c2_71, %c0_72, %c0_73], %175 {strides = array<i32>} : memref<1x3x8x128xf32, #tpu.memory_space<vmem>>, vector<1x1x8x128xf32>,
    } else {
    }
    return
  }
  func.func @transform_0(%arg0: i32, %arg1: i32) -> (i32, i32) {
    %c1_i32 = arith.constant 1 : i32
    %0 = arith.muli %arg0, %c1_i32 : i32
    %1 = arith.addi %0, %arg1 : i32
    %c0_i32 = arith.constant 0 : i32
    %2 = arith.minsi %1, %c0_i32 : i32
    %c0_i32_0 = arith.constant 0 : i32
    %c0_i32_1 = arith.constant 0 : i32
    return %2, %c0_i32_0 : i32, i32
  }
  func.func @transform_1(%arg0: i32, %arg1: i32) -> (i32, i32) {
    %c1_i32 = arith.constant 1 : i32
    %0 = arith.muli %arg0, %c1_i32 : i32
    %1 = arith.addi %0, %arg1 : i32
    %c0_i32 = arith.constant 0 : i32
    %2 = arith.minsi %1, %c0_i32 : i32
    %c0_i32_0 = arith.constant 0 : i32
    %c0_i32_1 = arith.constant 0 : i32
    return %2, %c0_i32_0 : i32, i32
  }
  func.func @transform_2(%arg0: i32, %arg1: i32) -> (i32, i32, i32, i32) {
    %c0_i32 = arith.constant 0 : i32
    %c0_i32_0 = arith.constant 0 : i32
    %c0_i32_1 = arith.constant 0 : i32
    %c0_i32_2 = arith.constant 0 : i32
    return %arg0, %c0_i32, %c0_i32_0, %c0_i32_1 : i32, i32, i32, i32
  }
}

</mosaic_0001>

<bundles_post_ra>
// kernel: tpu_custom_call.1
= control target key start
LH: loop header
LB: loop body
LE: loop exit
PB: predicated region body
PF: predicated region fallthrough
CT: control target
= control target key end

     0   :  { %7 = vsyncpa [#allocation3], 0  ;;  %s469_s0 = inlined_call_operand.hbm [shape: f32[16,128], index: 0, kind: input, shape index: {}]   ;;  %s470_s1 = inlined_call_operand.hbm [shape: f32[16,128], index: 1, kind: input, shape index: {}]   ;;  %s471_s2 = inlined_call_operand.hbm [shape: f32[1,3,8,128], index: 2, kind: output, shape index: {}]  }
   0x1   :  { %8 = vsyncpa [#allocation6], 0 }
   0x2   :  { %9 = vsyncpa [#allocation4], 0 }
   0x3   :  { %20 = vsyncadd [#allocation3], 256  ;;  %s404_s9 = smov [#allocation2]   ;;  %s332_s13 = scalar_lea.hbm %s469_s0, 256 }
   0x4   :  { %s25_s10 = sshll.u32 %s404_s9, 4  ;;  %p333_p0 = scmp.ne.s32.totalorder %s469_s0, %s332_s13  ;;  %s26_s10 = int_to_ptr.vmem [resolvable:$true] %s25_s10 }
   0x5   :  { %p336_p1 = scmp.lt.u32.totalorder %s332_s13, %s469_s0 }
   0x7   :  { %p338_p2 = pnand %p336_p1, %p333_p0 }
   0x9   :  { %341 = shalt.err (!%p338_p2)
}
   0xa   :  { %s342_s18 = scalar_lea.vmem %s26_s10, 256  ;;  %s346_s19 = scalar_lea.vmem %s26_s10, 512 }
   0xb   :  { %p343_p3 = scmp.ne.s32.totalorder %s26_s10, %s342_s18  ;;  %p347_p4 = scmp.lt.s32.totalorder %s26_s10, %s26_s10 }
   0xc   :  { %p348_p5 = scmp.lt.s32.totalorder %s346_s19, %s342_s18 }
   0xe   :  { %p349_p6 = por %p348_p5, %p347_p4 }
  0x10   :  { %p350_p7 = pnand %p349_p6, %p343_p3 }
  0x12   :  { %353 = shalt.err (!%p350_p7)
}
  0x13   :  { %s405_s20 = smov 128   ;;  %s406_s21 = smov 8  }
  0x14   :  { %31 = dma.hbm_to_vmem [thread:$0]  %s469_s0, 256, %s26_s10, [#allocation3], %s405_s20, %s405_s20, %s406_s21  }
  0x15   :  { %42 = vsyncadd [#allocation6], 256  ;;  %s407_s24 = smov [#allocation5]   ;;  %s354_s28 = scalar_lea.hbm %s470_s1, 256 }
  0x16   :  { %s47_s25 = sshll.u32 %s407_s24, 4  ;;  %p355_p8 = scmp.ne.s32.totalorder %s470_s1, %s354_s28  ;;  %s48_s25 = int_to_ptr.vmem [resolvable:$true] %s47_s25 }
  0x17   :  { %p358_p9 = scmp.lt.u32.totalorder %s354_s28, %s470_s1 }
  0x19   :  { %p360_p10 = pnand %p358_p9, %p355_p8 }
  0x1b   :  { %363 = shalt.err (!%p360_p10)
}
  0x1c   :  { %s364_s5 = scalar_lea.vmem %s48_s25, 256  ;;  %s368_s0 = scalar_lea.vmem %s48_s25, 512 }
  0x1d   :  { %p365_p11 = scmp.ne.s32.totalorder %s48_s25, %s364_s5  ;;  %p369_p12 = scmp.lt.s32.totalorder %s48_s25, %s48_s25 }
  0x1e   :  { %p370_p13 = scmp.lt.s32.totalorder %s368_s0, %s364_s5 }
  0x20   :  { %p371_p0 = por %p370_p13, %p369_p12 }
  0x22   :  { %p372_p1 = pnand %p371_p0, %p365_p11 }
  0x24   :  { %375 = shalt.err (!%p372_p1)
}
  0x25   :  { %53 = dma.hbm_to_vmem [thread:$0]  %s470_s1, 256, %s48_s25, [#allocation6], %s405_s20, %s405_s20, %s406_s21  }
  0x26   :  { %398 = dma.done.wait [#allocation3], 512  }
  0x27   :  { %399 = vsyncadd [#allocation3], 4294966784 }
  0x28   :  { %400 = dma.done.wait [#allocation6], 512  }
  0x29   :  { %401 = vsyncadd [#allocation6], 4294966784  ;;  %v180_v0 = vld [vmem:[#allocation2] sm:$0xff]  ;;  %v205_v2 = vld [vmem:[#allocation2 + $0x8] sm:$0xff]  ;;  %s408_s1 = smov [#allocation7]  }
  0x2a   :  { %v181_v1 = vld [vmem:[#allocation5] sm:$0xff]  ;;  %v207_v4 = vld [vmem:[#allocation5 + $0x8] sm:$0xff]  ;;  %v184_v6 = vadd.f32 1e-09, %v180_v0  ;;  %v189_v9 = vsub.f32 1.0, %v180_v0  ;;  %v215_v11 = vsub.f32 1.0, %v205_v2 }
  0x2b   :  { %v182_v3 = vmul.f32 %v181_v1, %v180_v0  ;;  %v183_v5 = vadd.f32 %v181_v1, %v180_v0  ;;  %v208_v7 = vmul.f32 %v207_v4, %v205_v2  ;;  %v209_v8 = vadd.f32 %v207_v4, %v205_v2  ;;  %s301_s8 = sshll.u32 %s408_s1, 4  ;;  %s302_s8 = int_to_ptr.vmem [resolvable:$true] %s301_s8 }
  0x2c   :  { %v210_v10 = vadd.f32 1e-09, %v205_v2  ;;  %324 = vlog2.f32 %v184_v6  ;;  %v190_v14 = vadd.f32 1e-09, %v189_v9  ;;  %v216_v15 = vadd.f32 1e-09, %v215_v11  ;;  %p381_p3 = scmp.lt.s32.totalorder %s302_s8, %s302_s8 }
  0x2d   :  { %v228_v12 = vadd.f32 %v208_v7, %v182_v3  ;;  %v229_v13 = vadd.f32 %v209_v8, %v183_v5  ;;  %v188_v19 = vsub.f32 1.0, %v181_v1  ;;  %v214_v22 = vsub.f32 1.0, %v207_v4  ;;  %s376_s9 = scalar_lea.vmem %s302_s8, 384 }
  0x2e   :  { %326 = vlog2.f32 %v210_v10  ;;  %p377_p2 = scmp.ne.s32.totalorder %s302_s8, %s376_s9  ;;  %p382_p4 = scmp.lt.s32.totalorder %s376_s9, %s376_s9 }
  0x2f   :  { %328 = vlog2.f32 %v190_v14  ;;  %287 = vst [vmem:[#allocation7] sm:$0xff] %v228_v12  ;;  %291 = vst [vmem:[#allocation7 + $0x8] sm:$0xff] %v229_v13 }
  0x30   :  { %330 = vlog2.f32 %v216_v15  ;;  %p383_p5 = por %p382_p4, %p381_p3 }
  0x32   :  { %p384_p6 = pnand %p383_p5, %p377_p2 }
  0x36   :  { %v325_v16 = vpop.eup %324 }
  0x37   :  { %v186_v18 = vmul.f32 0.6931472, %v325_v16 }
  0x38   :  { %v327_v17 = vpop.eup %326 }
  0x39   :  { %v212_v20 = vmul.f32 0.6931472, %v327_v17  ;;  %v329_v21 = vpop.eup %328  ;;  %v187_v24 = vmul.f32 %v186_v18, %v181_v1 }
  0x3a   :  { %v331_v23 = vpop.eup %330  ;;  %v192_v25 = vmul.f32 0.6931472, %v329_v21 }
  0x3b   :  { %v213_v26 = vmul.f32 %v212_v20, %v207_v4  ;;  %v218_v27 = vmul.f32 0.6931472, %v331_v23 }
  0x3c   :  { %v193_v28 = vmul.f32 %v192_v25, %v188_v19 }
  0x3d   :  { %v219_v29 = vmul.f32 %v218_v27, %v214_v22 }
  0x3e   :  { %v194_v30 = vadd.f32 %v193_v28, %v187_v24 }
  0x3f   :  { %v220_v31 = vadd.f32 %v219_v29, %v213_v26 }
  0x41   :  { %v230_v32 = vadd.f32 %v220_v31, %v194_v30 }
  0x43   :  { %295 = vst [vmem:[#allocation7 + $0x10] sm:$0xff] %v230_v32 }
  0x44   :  { %387 = shalt.err (!%p384_p6)
}
  0x45   :  { %s388_s12 = scalar_lea.hbm %s471_s2, 384 }
  0x46   :  { %p389_p7 = scmp.ne.s32.totalorder %s471_s2, %s388_s12  ;;  %p392_p8 = scmp.lt.u32.totalorder %s388_s12, %s471_s2 }
  0x48   :  { %p394_p9 = pnand %p392_p8, %p389_p7 }
  0x4a   :  { %397 = shalt.err (!%p394_p9)
}
  0x4b   :  { %307 = dma.vmem_to_hbm [thread:$0]  %s302_s8, 384, %s471_s2, [#allocation4], %s405_s20, %s405_s20, %s406_s21  }
  0x4c   :  { %402 = dma.done.wait [#allocation4], 384  }
  0x4d   :  { %403 = vsyncadd [#allocation4], 4294966912 }
  0x4e   :  { %311 = vsyncpa [#allocation3], 1 }
  0x4f   :  { %312 = vsyncpa [#allocation6], 1 }
  0x50   :  { %313 = vsyncpa [#allocation4], 1 }

</bundles_post_ra>
